<compile_context>
chip_gen: v7x
topology: tpu7x:2x2x1
jax: 0.10.0
libtpu: 0.0.40
codegen_flags: <defaults>
</compile_context>

<pallas_src>
import functools

import jax
import jax.numpy as jnp
from jax.experimental import pallas as pl
from jax.experimental.pallas import tpu as pltpu


# ----------------------------------------------------------------------------
# Fused kernel: attention + weighted context + L-layer GRU step + fc_out
# ----------------------------------------------------------------------------

def fused_decoder_kernel(num_layers,
                         inp_ref,      # (B, I)
                         dec_ref,      # (B, Hd)
                         enc_ref,      # (S, B, He)
                         hid_in_ref,   # (L, B, Hd)   (aliased to hid_out)
                         attn_w_ref,   # (Hd+He, Hd)  rows = [W_dec ; W_enc]
                         attn_bv_ref,  # (2, Hd)      rows = [b_a ; v]
                         wih0_ref,     # (I+He, 3Hd)  gates packed (r|z|n) on lanes
                         *rest):
    # rest layout:
    #   [wih_rest (L-1, Hd, 3Hd)]   (only present when num_layers > 1)
    #   whh  (L, Hd, 3Hd)
    #   bias (L, 2, 3Hd)            row 0 = b_ih, row 1 = b_hh (gates r|z|n)
    #   fc_w (I+He+Hd, P)  fc_b (1, P)
    #   outputs: hid_out (L, B, Hd), pred (B, P)
    hid_out_ref, pred_ref = rest[-2], rest[-1]
    fc_w_ref, fc_b_ref = rest[-4], rest[-3]
    if num_layers > 1:
        wih_rest_ref, whh_ref, bias_ref = rest[0], rest[1], rest[2]
    else:
        wih_rest_ref = None
        whh_ref, bias_ref = rest[0], rest[1]

    inp = inp_ref[...]
    dec = dec_ref[...]
    enc = enc_ref[...]
    S, B, He = enc.shape
    Hd = dec.shape[-1]

    # hid_in is aliased to the hid_out buffer: load everything before writing.
    h_prev_all = hid_in_ref[...]                                    # (L, B, Hd)

    # ---- additive attention + weighted context ------------------------------
    w_dec = attn_w_ref[:Hd, :]                                      # (Hd, Hd)
    w_enc = attn_w_ref[Hd:, :]                                      # (He, Hd)
    b_a = attn_bv_ref[0:1, :]                                       # (1, Hd)
    v = attn_bv_ref[1:2, :]                                         # (1, Hd)

    dec_part = jnp.dot(dec, w_dec,
                       preferred_element_type=jnp.float32) + b_a    # (B, Hd)
    enc_part = jnp.dot(enc.reshape(S * B, He), w_enc,
                       preferred_element_type=jnp.float32)          # (S*B, Hd)
    energy = jnp.tanh(enc_part.reshape(S, B, Hd) + dec_part[None])  # (S, B, Hd)

    # scores kept as a (S, B, 1) column so batch stays on sublanes throughout.
    scores = jnp.sum(energy * v[None], axis=-1, keepdims=True)      # (S, B, 1)
    scores = scores - jnp.max(scores, axis=0, keepdims=True)
    e = jnp.exp(scores)
    w = e / jnp.sum(e, axis=0, keepdims=True)                       # exact softmax
    ctx = jnp.sum(w * enc, axis=0)                                  # (B, He)

    # ---- GRU stack (one step, PyTorch gate order r, z, n; gates lane-packed) --
    x = jnp.concatenate([inp, ctx], axis=-1)                        # (B, I+He)
    for l in range(num_layers):
        h_prev = h_prev_all[l]                                      # (B, Hd)
        wih = wih0_ref[...] if l == 0 else wih_rest_ref[l - 1]
        b = bias_ref[l]                                             # (2, 3Hd)
        gi = jnp.dot(x, wih, preferred_element_type=jnp.float32) + b[0:1, :]
        gh = (jnp.dot(h_prev, whh_ref[l], preferred_element_type=jnp.float32)
              + b[1:2, :])
        s = gi + gh                                                 # (B, 3Hd)
        r = jax.nn.sigmoid(s[:, :Hd])
        z = jax.nn.sigmoid(s[:, Hd:2 * Hd])
        n = jnp.tanh(gi[:, 2 * Hd:] + r * gh[:, 2 * Hd:])
        h_new = (1.0 - z) * n + z * h_prev
        hid_out_ref[l] = h_new.astype(hid_out_ref.dtype)            # direct write
        x = h_new

    # ---- fc_out: single lane concat + single MXU push (lane-dense output) ----
    xc = jnp.concatenate([inp, ctx, x], axis=-1)                    # (B, I+He+Hd)
    pred = (jnp.dot(xc, fc_w_ref[...], preferred_element_type=jnp.float32)
            + fc_b_ref[...])
    pred_ref[...] = pred.astype(pred_ref.dtype)


# ----------------------------------------------------------------------------
# Parameter construction (deterministic, PyTorch-style uniform init)
# ----------------------------------------------------------------------------

def _uniform(key, shape, fan_in):
    k = 1.0 / jnp.sqrt(jnp.float32(fan_in))
    return jax.random.uniform(key, shape, jnp.float32, -k, k)


def init_params(key, input_size, enc_hidden, dec_hidden, output_size, num_layers,
                lane_pad=128):
    keys = jax.random.split(key, 12)
    ki = iter(keys)
    H = dec_hidden
    p = {}

    # Additive attention, packed: rows [W_dec ; W_enc], rows [b_a ; v].
    attn_fan = enc_hidden + dec_hidden
    wdec = _uniform(next(ki), (dec_hidden, H), attn_fan)
    wenc = _uniform(next(ki), (enc_hidden, H), attn_fan)
    b_a = _uniform(next(ki), (1, H), attn_fan)
    v = _uniform(next(ki), (1, H), dec_hidden)
    p["attn_w"] = jnp.concatenate([wdec, wenc], axis=0)      # (Hd+He, Hd)
    p["attn_bv"] = jnp.concatenate([b_a, v], axis=0)         # (2, Hd)

    # GRU stack: gates packed on the lane axis in PyTorch order (r | z | n).
    in0 = input_size + enc_hidden
    p["wih0"] = _uniform(next(ki), (in0, 3 * H), H)
    if num_layers > 1:
        p["wih_rest"] = _uniform(next(ki), (num_layers - 1, H, 3 * H), H)
    p["whh"] = _uniform(next(ki), (num_layers, H, 3 * H), H)
    p["bias"] = _uniform(next(ki), (num_layers, 2, 3 * H), H)   # [b_ih ; b_hh]

    # fc_out: Linear(input_size + He + Hd, output_size); single weight matrix,
    # zero-padded on the output (lane) axis to a multiple of 128.
    fc_in = input_size + enc_hidden + dec_hidden
    P = max(lane_pad, -(-output_size // lane_pad) * lane_pad)
    fc_w = _uniform(next(ki), (fc_in, output_size), fc_in)
    fc_b = _uniform(next(ki), (1, output_size), fc_in)
    p["fc_w"] = jnp.pad(fc_w, ((0, 0), (0, P - output_size)))
    p["fc_b"] = jnp.pad(fc_b, ((0, 0), (0, P - output_size)))
    return p
    # TODO(synk): optional bf16 weight cast (f32 accumulate, f32 elementwise)
    # for v6e/v7x is a one-line follow-up; kept f32 here for exact-parity tests.


# ----------------------------------------------------------------------------
# Decoder forward: one fused pallas_call, hidden aliased in place
# ----------------------------------------------------------------------------

@functools.partial(jax.jit, static_argnames=("output_size",))
def decoder_forward(params, inp, dec_outputs, enc_outputs, hidden, *, output_size):
    # Mirror the torch input massaging (then the later .squeeze(0)).
    if inp.ndim == 1:                       # torch: reshape(1, -1, 1) -> (B, 1)
        inp = inp.reshape(-1, 1)
    inp = inp.astype(jnp.float32)           # (B, I)

    B = inp.shape[0]
    S, _, He = enc_outputs.shape
    L, _, Hd = hidden.shape
    P = params["fc_b"].shape[-1]

    args = [inp, dec_outputs, enc_outputs, hidden,
            params["attn_w"], params["attn_bv"], params["wih0"]]
    if L > 1:
        args.append(params["wih_rest"])
    args += [params["whh"], params["bias"], params["fc_w"], params["fc_b"]]

    hid_out, pred_pad = pl.pallas_call(
        functools.partial(fused_decoder_kernel, L),
        out_shape=(jax.ShapeDtypeStruct((L, B, Hd), jnp.float32),
                   jax.ShapeDtypeStruct((B, P), jnp.float32)),
        in_specs=[pl.BlockSpec(memory_space=pltpu.MemorySpace.VMEM)
                  for _ in args],
        out_specs=(pl.BlockSpec(memory_space=pltpu.MemorySpace.VMEM),
                   pl.BlockSpec(memory_space=pltpu.MemorySpace.VMEM)),
        input_output_aliases={3: 0},        # hidden -> hid_out, in place
    )(*args)

    prediction = pred_pad[:, :output_size]
    outputs = hid_out[-1]                   # top layer == squeezed rnn output
    return prediction, outputs, hid_out

    # TODO(synk): the require_attention=False branch (context = enc_outputs[-1])
    # is not implemented.
    # TODO(synk): the module's forward is a single decode step; the
    # autoregressive multi-step loop (VMEM-resident weights/hidden across steps,
    # v7x parallel grid axis) lives in the caller and is not fused here.


# ----------------------------------------------------------------------------
# Pure-JAX reference (same math, no Pallas) for a correctness check
# ----------------------------------------------------------------------------

def decoder_forward_ref(params, inp, dec_outputs, enc_outputs, hidden, *, output_size):
    if inp.ndim == 1:
        inp = inp.reshape(-1, 1)
    inp = inp.astype(jnp.float32)
    S, B, He = enc_outputs.shape
    L, _, Hd = hidden.shape

    w_dec = params["attn_w"][:Hd]
    w_enc = params["attn_w"][Hd:]
    b_a = params["attn_bv"][0:1]
    v = params["attn_bv"][1:2]

    dec_part = dec_outputs @ w_dec + b_a
    enc_part = jnp.einsum("sbe,ed->sbd", enc_outputs, w_enc)
    energy = jnp.tanh(enc_part + dec_part[None])
    scores = jnp.sum(energy * v[None], axis=-1)
    w = jax.nn.softmax(scores, axis=0)
    ctx = jnp.sum(w[:, :, None] * enc_outputs, axis=0)

    x = jnp.concatenate([inp, ctx], axis=-1)
    new_hidden = []
    for l in range(L):
        h = hidden[l]
        wih = params["wih0"] if l == 0 else params["wih_rest"][l - 1]
        gi = x @ wih + params["bias"][l, 0:1]
        gh = h @ params["whh"][l] + params["bias"][l, 1:2]
        r = jax.nn.sigmoid(gi[:, :Hd] + gh[:, :Hd])
        z = jax.nn.sigmoid(gi[:, Hd:2 * Hd] + gh[:, Hd:2 * Hd])
        n = jnp.tanh(gi[:, 2 * Hd:] + r * gh[:, 2 * Hd:])
        h_new = (1.0 - z) * n + z * h
        new_hidden.append(h_new)
        x = h_new
    outputs = x
    xc = jnp.concatenate([inp, ctx, outputs], axis=-1)
    pred = (xc @ params["fc_w"] + params["fc_b"])[:, :output_size]
    return pred, outputs, jnp.stack(new_hidden, axis=0)


# ----------------------------------------------------------------------------

if __name__ == "__main__":
    B = 8            # batch
    I = 4            # input_size
    He = 32          # enc_hidden_size
    Hd = 32          # dec_hidden_size
    O = 2            # output_size
    S = 8            # source sequence length
    L = 2            # num_layers

    key = jax.random.PRNGKey(0)
    kp, k1, k2, k3, k4 = jax.random.split(key, 5)

    params = init_params(kp, I, He, Hd, O, L)

    inp = jax.random.normal(k1, (B, I), jnp.float32)
    dec_outputs = jax.random.normal(k2, (B, Hd), jnp.float32)
    enc_outputs = jax.random.normal(k3, (S, B, He), jnp.float32)
    hidden = jax.random.normal(k4, (L, B, Hd), jnp.float32)

    pred, outputs, hidden_states = decoder_forward(
        params, inp, dec_outputs, enc_outputs, hidden, output_size=O)
    jax.block_until_ready((pred, outputs, hidden_states))

    # Correctness check against the pure-JAX reference. The attention softmax
    # is exact now (no approx reciprocal); the remaining tolerance only covers
    # MXU-vs-XLA f32 matmul pass/precision differences on TPU.
    pred_r, out_r, hid_r = decoder_forward_ref(
        params, inp, dec_outputs, enc_outputs, hidden, output_size=O)
    assert pred.shape == (B, O) and outputs.shape == (B, Hd) \
        and hidden_states.shape == (L, B, Hd)
    assert jnp.allclose(pred, pred_r, atol=2e-3, rtol=2e-3)
    assert jnp.allclose(outputs, out_r, atol=2e-3, rtol=2e-3)
    assert jnp.allclose(hidden_states, hid_r, atol=2e-3, rtol=2e-3)

    # TODO(synk): dropout arg is unused in the original forward (self.dropout
    # never applied), so it is intentionally omitted here.
    print("KERNEL_OK")
</pallas_src>

<mosaic_0001>
module attributes {stable_mosaic.version = 11 : i64} {
  func.func @fused_decoder_kernel(%arg0: memref<8x4xf32, #tpu.memory_space<vmem>>, %arg1: memref<8x32xf32, #tpu.memory_space<vmem>>, %arg2: memref<8x8x32xf32, #tpu.memory_space<vmem>>, %arg3: memref<2x8x32xf32, #tpu.memory_space<vmem>>, %arg4: memref<64x32xf32, #tpu.memory_space<vmem>>, %arg5: memref<2x32xf32, #tpu.memory_space<vmem>>, %arg6: memref<36x96xf32, #tpu.memory_space<vmem>>, %arg7: memref<1x32x96xf32, #tpu.memory_space<vmem>>, %arg8: memref<2x32x96xf32, #tpu.memory_space<vmem>>, %arg9: memref<2x2x96xf32, #tpu.memory_space<vmem>>, %arg10: memref<68x128xf32, #tpu.memory_space<vmem>>, %arg11: memref<1x128xf32, #tpu.memory_space<vmem>>, %arg12: memref<2x8x32xf32, #tpu.memory_space<vmem>>, %arg13: memref<8x128xf32, #tpu.memory_space<vmem>>) attributes {dimension_semantics = [], scalar_prefetch = 0 : i64, scratch_operands = 0 : i64, tpu.core_type = #tpu.core_type<tc>} {
    %c0 = arith.constant 0 : index
    %c0_0 = arith.constant 0 : index
    %0 = vector.load %arg0[%c0, %c0_0] : memref<8x4xf32, #tpu.memory_space<vmem>>, vector<8x4xf32>
    %c0_1 = arith.constant 0 : index
    %c0_2 = arith.constant 0 : index
    %1 = vector.load %arg1[%c0_1, %c0_2] : memref<8x32xf32, #tpu.memory_space<vmem>>, vector<8x32xf32>
    %c0_3 = arith.constant 0 : index
    %c0_4 = arith.constant 0 : index
    %c0_5 = arith.constant 0 : index
    %2 = vector.load %arg2[%c0_3, %c0_4, %c0_5] : memref<8x8x32xf32, #tpu.memory_space<vmem>>, vector<8x8x32xf32>
    %c0_6 = arith.constant 0 : index
    %c0_7 = arith.constant 0 : index
    %c0_8 = arith.constant 0 : index
    %3 = vector.load %arg3[%c0_6, %c0_7, %c0_8] : memref<2x8x32xf32, #tpu.memory_space<vmem>>, vector<2x8x32xf32>
    %c0_9 = arith.constant 0 : index
    %c0_10 = arith.constant 0 : index
    %4 = vector.load %arg4[%c0_9, %c0_10] : memref<64x32xf32, #tpu.memory_space<vmem>>, vector<32x32xf32>
    %c32 = arith.constant 32 : index
    %c0_11 = arith.constant 0 : index
    %5 = vector.load %arg4[%c32, %c0_11] : memref<64x32xf32, #tpu.memory_space<vmem>>, vector<32x32xf32>
    %c0_12 = arith.constant 0 : index
    %c0_13 = arith.constant 0 : index
    %6 = vector.load %arg5[%c0_12, %c0_13] : memref<2x32xf32, #tpu.memory_space<vmem>>, vector<1x32xf32>
    %c1 = arith.constant 1 : index
    %c0_14 = arith.constant 0 : index
    %7 = vector.load %arg5[%c1, %c0_14] : memref<2x32xf32, #tpu.memory_space<vmem>>, vector<1x32xf32>
    %cst = arith.constant dense<0.000000e+00> : vector<8x32xf32>
    %8 = tpu.matmul %1, %4, %cst {dimension_numbers = #tpu.dot_dimension_numbers<[1], [0], [0], [1], [0, 0, 1, 1], [], []>} : vector<8x32xf32>, vector<32x32xf32>, vector<8x32xf32> -> vector<8x32xf32>
    %9 = vector.broadcast %6 : vector<1x32xf32> to vector<8x32xf32>
    %10 = arith.addf %8, %9 : vector<8x32xf32>
    %11 = vector.shape_cast %2 : vector<8x8x32xf32> to vector<64x32xf32>
    %cst_15 = arith.constant dense<0.000000e+00> : vector<64x32xf32>
    %12 = tpu.matmul %11, %5, %cst_15 {dimension_numbers = #tpu.dot_dimension_numbers<[1], [0], [0], [1], [0, 0, 1, 1], [], []>} : vector<64x32xf32>, vector<32x32xf32>, vector<64x32xf32> -> vector<64x32xf32>
    %13 = vector.shape_cast %12 : vector<64x32xf32> to vector<8x8x32xf32>
    %14 = vector.shape_cast %10 : vector<8x32xf32> to vector<1x8x32xf32>
    %15 = vector.broadcast %14 : vector<1x8x32xf32> to vector<8x8x32xf32>
    %16 = arith.addf %13, %15 : vector<8x8x32xf32>
    %17 = math.tanh %16 : vector<8x8x32xf32>
    %18 = vector.shape_cast %7 : vector<1x32xf32> to vector<1x1x32xf32>
    %19 = vector.broadcast %18 : vector<1x1x32xf32> to vector<8x8x32xf32>
    %20 = arith.mulf %17, %19 : vector<8x8x32xf32>
    %cst_16 = arith.constant dense<0.000000e+00> : vector<8x8xf32>
    %21 = vector.multi_reduction <add>, %20, %cst_16 [2] : vector<8x8x32xf32> to vector<8x8xf32>
    %22 = vector.shape_cast %21 : vector<8x8xf32> to vector<8x8x1xf32>
    %cst_17 = arith.constant dense<0xFF800000> : vector<8x1xf32>
    %23 = vector.multi_reduction <maximumf>, %22, %cst_17 [0] : vector<8x8x1xf32> to vector<8x1xf32>
    %24 = vector.shape_cast %23 : vector<8x1xf32> to vector<1x8x1xf32>
    %25 = vector.broadcast %24 : vector<1x8x1xf32> to vector<8x8x1xf32>
    %26 = arith.subf %22, %25 : vector<8x8x1xf32>
    %27 = math.exp %26 : vector<8x8x1xf32>
    %cst_18 = arith.constant dense<0.000000e+00> : vector<8x1xf32>
    %28 = vector.multi_reduction <add>, %27, %cst_18 [0] : vector<8x8x1xf32> to vector<8x1xf32>
    %29 = vector.shape_cast %28 : vector<8x1xf32> to vector<1x8x1xf32>
    %30 = vector.broadcast %29 : vector<1x8x1xf32> to vector<8x8x1xf32>
    %31 = arith.divf %27, %30 : vector<8x8x1xf32>
    %32 = vector.broadcast %31 : vector<8x8x1xf32> to vector<8x8x32xf32>
    %33 = arith.mulf %32, %2 : vector<8x8x32xf32>
    %cst_19 = arith.constant dense<0.000000e+00> : vector<8x32xf32>
    %34 = vector.multi_reduction <add>, %33, %cst_19 [0] : vector<8x8x32xf32> to vector<8x32xf32>
    %35 = tpu.concatenate %0, %34 in 1 : vector<8x4xf32>, vector<8x32xf32> -> vector<8x36xf32>
    %36 = vector.extract_strided_slice %3 {offsets = [0, 0, 0], sizes = [1, 8, 32], strides = [1, 1, 1]} : vector<2x8x32xf32> to vector<1x8x32xf32>
    %37 = vector.shape_cast %36 : vector<1x8x32xf32> to vector<8x32xf32>
    %c0_20 = arith.constant 0 : index
    %c0_21 = arith.constant 0 : index
    %38 = vector.load %arg6[%c0_20, %c0_21] : memref<36x96xf32, #tpu.memory_space<vmem>>, vector<36x96xf32>
    %c0_22 = arith.constant 0 : index
    %c0_23 = arith.constant 0 : index
    %c0_24 = arith.constant 0 : index
    %39 = vector.load %arg9[%c0_22, %c0_23, %c0_24] : memref<2x2x96xf32, #tpu.memory_space<vmem>>, vector<1x2x96xf32>
    %40 = vector.shape_cast %39 : vector<1x2x96xf32> to vector<2x96xf32>
    %cst_25 = arith.constant dense<0.000000e+00> : vector<8x96xf32>
    %41 = tpu.matmul %35, %38, %cst_25 {dimension_numbers = #tpu.dot_dimension_numbers<[1], [0], [0], [1], [0, 0, 1, 1], [], []>} : vector<8x36xf32>, vector<36x96xf32>, vector<8x96xf32> -> vector<8x96xf32>
    %42 = vector.extract_strided_slice %40 {offsets = [0, 0], sizes = [1, 96], strides = [1, 1]} : vector<2x96xf32> to vector<1x96xf32>
    %43 = vector.broadcast %42 : vector<1x96xf32> to vector<8x96xf32>
    %44 = arith.addf %41, %43 : vector<8x96xf32>
    %c0_26 = arith.constant 0 : index
    %c0_27 = arith.constant 0 : index
    %c0_28 = arith.constant 0 : index
    %45 = vector.load %arg8[%c0_26, %c0_27, %c0_28] : memref<2x32x96xf32, #tpu.memory_space<vmem>>, vector<1x32x96xf32>
    %46 = vector.shape_cast %45 : vector<1x32x96xf32> to vector<32x96xf32>
    %cst_29 = arith.constant dense<0.000000e+00> : vector<8x96xf32>
    %47 = tpu.matmul %37, %46, %cst_29 {dimension_numbers = #tpu.dot_dimension_numbers<[1], [0], [0], [1], [0, 0, 1, 1], [], []>} : vector<8x32xf32>, vector<32x96xf32>, vector<8x96xf32> -> vector<8x96xf32>
    %48 = vector.extract_strided_slice %40 {offsets = [1, 0], sizes = [1, 96], strides = [1, 1]} : vector<2x96xf32> to vector<1x96xf32>
    %49 = vector.broadcast %48 : vector<1x96xf32> to vector<8x96xf32>
    %50 = arith.addf %47, %49 : vector<8x96xf32>
    %51 = arith.addf %44, %50 : vector<8x96xf32>
    %52 = vector.extract_strided_slice %51 {offsets = [0, 0], sizes = [8, 32], strides = [1, 1]} : vector<8x96xf32> to vector<8x32xf32>
    %53 = arith.negf %52 : vector<8x32xf32>
    %54 = math.exp %53 : vector<8x32xf32>
    %cst_30 = arith.constant 1.000000e+00 : f32
    %55 = vector.broadcast %cst_30 : f32 to vector<8x32xf32>
    %56 = arith.addf %55, %54 : vector<8x32xf32>
    %57 = arith.divf %55, %56 : vector<8x32xf32>
    %58 = vector.extract_strided_slice %51 {offsets = [0, 32], sizes = [8, 32], strides = [1, 1]} : vector<8x96xf32> to vector<8x32xf32>
    %59 = arith.negf %58 : vector<8x32xf32>
    %60 = math.exp %59 : vector<8x32xf32>
    %cst_31 = arith.constant 1.000000e+00 : f32
    %61 = vector.broadcast %cst_31 : f32 to vector<8x32xf32>
    %62 = arith.addf %61, %60 : vector<8x32xf32>
    %63 = arith.divf %61, %62 : vector<8x32xf32>
    %64 = vector.extract_strided_slice %44 {offsets = [0, 64], sizes = [8, 32], strides = [1, 1]} : vector<8x96xf32> to vector<8x32xf32>
    %65 = vector.extract_strided_slice %50 {offsets = [0, 64], sizes = [8, 32], strides = [1, 1]} : vector<8x96xf32> to vector<8x32xf32>
    %66 = arith.mulf %57, %65 : vector<8x32xf32>
    %67 = arith.addf %64, %66 : vector<8x32xf32>
    %68 = math.tanh %67 : vector<8x32xf32>
    %cst_32 = arith.constant 1.000000e+00 : f32
    %69 = vector.broadcast %cst_32 : f32 to vector<8x32xf32>
    %70 = arith.subf %69, %63 : vector<8x32xf32>
    %71 = arith.mulf %70, %68 : vector<8x32xf32>
    %72 = arith.mulf %63, %37 : vector<8x32xf32>
    %73 = arith.addf %71, %72 : vector<8x32xf32>
    %c0_33 = arith.constant 0 : index
    %c0_34 = arith.constant 0 : index
    %c0_35 = arith.constant 0 : index
    %74 = vector.load %arg12[%c0_33, %c0_34, %c0_35] : memref<2x8x32xf32, #tpu.memory_space<vmem>>, vector<1x8x32xf32>
    %75 = vector.shape_cast %74 : vector<1x8x32xf32> to vector<8x32xf32>
    %76 = vector.shape_cast %73 : vector<8x32xf32> to vector<1x8x32xf32>
    tpu.vector_store %arg12[%c0_33, %c0_34, %c0_35], %76 {strides = array<i32>} : memref<2x8x32xf32, #tpu.memory_space<vmem>>, vector<1x8x32xf32>,
    %77 = vector.extract_strided_slice %3 {offsets = [1, 0, 0], sizes = [1, 8, 32], strides = [1, 1, 1]} : vector<2x8x32xf32> to vector<1x8x32xf32>
    %78 = vector.shape_cast %77 : vector<1x8x32xf32> to vector<8x32xf32>
    %c0_36 = arith.constant 0 : index
    %c0_37 = arith.constant 0 : index
    %c0_38 = arith.constant 0 : index
    %79 = vector.load %arg7[%c0_36, %c0_37, %c0_38] : memref<1x32x96xf32, #tpu.memory_space<vmem>>, vector<1x32x96xf32>
    %80 = vector.shape_cast %79 : vector<1x32x96xf32> to vector<32x96xf32>
    %c1_39 = arith.constant 1 : index
    %c0_40 = arith.constant 0 : index
    %c0_41 = arith.constant 0 : index
    %81 = vector.load %arg9[%c1_39, %c0_40, %c0_41] : memref<2x2x96xf32, #tpu.memory_space<vmem>>, vector<1x2x96xf32>
    %82 = vector.shape_cast %81 : vector<1x2x96xf32> to vector<2x96xf32>
    %cst_42 = arith.constant dense<0.000000e+00> : vector<8x96xf32>
    %83 = tpu.matmul %73, %80, %cst_42 {dimension_numbers = #tpu.dot_dimension_numbers<[1], [0], [0], [1], [0, 0, 1, 1], [], []>} : vector<8x32xf32>, vector<32x96xf32>, vector<8x96xf32> -> vector<8x96xf32>
    %84 = vector.extract_strided_slice %82 {offsets = [0, 0], sizes = [1, 96], strides = [1, 1]} : vector<2x96xf32> to vector<1x96xf32>
    %85 = vector.broadcast %84 : vector<1x96xf32> to vector<8x96xf32>
    %86 = arith.addf %83, %85 : vector<8x96xf32>
    %c1_43 = arith.constant 1 : index
    %c0_44 = arith.constant 0 : index
    %c0_45 = arith.constant 0 : index
    %87 = vector.load %arg8[%c1_43, %c0_44, %c0_45] : memref<2x32x96xf32, #tpu.memory_space<vmem>>, vector<1x32x96xf32>
    %88 = vector.shape_cast %87 : vector<1x32x96xf32> to vector<32x96xf32>
    %cst_46 = arith.constant dense<0.000000e+00> : vector<8x96xf32>
    %89 = tpu.matmul %78, %88, %cst_46 {dimension_numbers = #tpu.dot_dimension_numbers<[1], [0], [0], [1], [0, 0, 1, 1], [], []>} : vector<8x32xf32>, vector<32x96xf32>, vector<8x96xf32> -> vector<8x96xf32>
    %90 = vector.extract_strided_slice %82 {offsets = [1, 0], sizes = [1, 96], strides = [1, 1]} : vector<2x96xf32> to vector<1x96xf32>
    %91 = vector.broadcast %90 : vector<1x96xf32> to vector<8x96xf32>
    %92 = arith.addf %89, %91 : vector<8x96xf32>
    %93 = arith.addf %86, %92 : vector<8x96xf32>
    %94 = vector.extract_strided_slice %93 {offsets = [0, 0], sizes = [8, 32], strides = [1, 1]} : vector<8x96xf32> to vector<8x32xf32>
    %95 = arith.negf %94 : vector<8x32xf32>
    %96 = math.exp %95 : vector<8x32xf32>
    %cst_47 = arith.constant 1.000000e+00 : f32
    %97 = vector.broadcast %cst_47 : f32 to vector<8x32xf32>
    %98 = arith.addf %97, %96 : vector<8x32xf32>
    %99 = arith.divf %97, %98 : vector<8x32xf32>
    %100 = vector.extract_strided_slice %93 {offsets = [0, 32], sizes = [8, 32], strides = [1, 1]} : vector<8x96xf32> to vector<8x32xf32>
    %101 = arith.negf %100 : vector<8x32xf32>
    %102 = math.exp %101 : vector<8x32xf32>
    %cst_48 = arith.constant 1.000000e+00 : f32
    %103 = vector.broadcast %cst_48 : f32 to vector<8x32xf32>
    %104 = arith.addf %103, %102 : vector<8x32xf32>
    %105 = arith.divf %103, %104 : vector<8x32xf32>
    %106 = vector.extract_strided_slice %86 {offsets = [0, 64], sizes = [8, 32], strides = [1, 1]} : vector<8x96xf32> to vector<8x32xf32>
    %107 = vector.extract_strided_slice %92 {offsets = [0, 64], sizes = [8, 32], strides = [1, 1]} : vector<8x96xf32> to vector<8x32xf32>
    %108 = arith.mulf %99, %107 : vector<8x32xf32>
    %109 = arith.addf %106, %108 : vector<8x32xf32>
    %110 = math.tanh %109 : vector<8x32xf32>
    %cst_49 = arith.constant 1.000000e+00 : f32
    %111 = vector.broadcast %cst_49 : f32 to vector<8x32xf32>
    %112 = arith.subf %111, %105 : vector<8x32xf32>
    %113 = arith.mulf %112, %110 : vector<8x32xf32>
    %114 = arith.mulf %105, %78 : vector<8x32xf32>
    %115 = arith.addf %113, %114 : vector<8x32xf32>
    %c1_50 = arith.constant 1 : index
    %c0_51 = arith.constant 0 : index
    %c0_52 = arith.constant 0 : index
    %116 = vector.load %arg12[%c1_50, %c0_51, %c0_52] : memref<2x8x32xf32, #tpu.memory_space<vmem>>, vector<1x8x32xf32>
    %117 = vector.shape_cast %116 : vector<1x8x32xf32> to vector<8x32xf32>
    %118 = vector.shape_cast %115 : vector<8x32xf32> to vector<1x8x32xf32>
    tpu.vector_store %arg12[%c1_50, %c0_51, %c0_52], %118 {strides = array<i32>} : memref<2x8x32xf32, #tpu.memory_space<vmem>>, vector<1x8x32xf32>,
    %119 = tpu.concatenate %0, %34, %115 in 1 : vector<8x4xf32>, vector<8x32xf32>, vector<8x32xf32> -> vector<8x68xf32>
    %c0_53 = arith.constant 0 : index
    %c0_54 = arith.constant 0 : index
    %120 = vector.load %arg10[%c0_53, %c0_54] : memref<68x128xf32, #tpu.memory_space<vmem>>, vector<68x128xf32>
    %cst_55 = arith.constant dense<0.000000e+00> : vector<8x128xf32>
    %121 = tpu.matmul %119, %120, %cst_55 {dimension_numbers = #tpu.dot_dimension_numbers<[1], [0], [0], [1], [0, 0, 1, 1], [], []>} : vector<8x68xf32>, vector<68x128xf32>, vector<8x128xf32> -> vector<8x128xf32>
    %c0_56 = arith.constant 0 : index
    %c0_57 = arith.constant 0 : index
    %122 = vector.load %arg11[%c0_56, %c0_57] : memref<1x128xf32, #tpu.memory_space<vmem>>, vector<1x128xf32>
    %123 = vector.broadcast %122 : vector<1x128xf32> to vector<8x128xf32>
    %124 = arith.addf %121, %123 : vector<8x128xf32>
    %c0_58 = arith.constant 0 : index
    %c0_59 = arith.constant 0 : index
    %125 = vector.load %arg13[%c0_58, %c0_59] : memref<8x128xf32, #tpu.memory_space<vmem>>, vector<8x128xf32>
    tpu.vector_store %arg13[%c0_58, %c0_59], %124 {strides = array<i32>} : memref<8x128xf32, #tpu.memory_space<vmem>>, vector<8x128xf32>,
    return
  }
}

</mosaic_0001>

<bundles_post_ra>
// kernel: decoder_forward.1
= control target key start
LH: loop header
LB: loop body
LE: loop exit
PB: predicated region body
PF: predicated region fallthrough
CT: control target
= control target key end

     0   :  { %19 = vsyncpa [#allocation3], 0  ;;  %s1710_s0 = inlined_call_operand.vmem [shape: f32[8,4], index: 0, kind: input, shape index: {}]   ;;  %s1711_s1 = inlined_call_operand.hbm [shape: f32[8,32], index: 1, kind: input, shape index: {}]   ;;  %s1712_s2 = inlined_call_operand.hbm [shape: f32[8,8,32], index: 2, kind: input, shape index: {}]   ;;  %s1713_s3 = inlined_call_operand.vmem [shape: f32[2,8,32], index: 3, kind: input, shape index: {}, may-alias: {3,12}]   ;;  %s1714_s4 = inlined_call_operand.vmem [shape: f32[64,32], index: 4, kind: input, shape index: {}]   ;;  %s1715_s5 = inlined_call_operand.vmem [shape: f32[2,32], index: 5, kind: input, shape index: {}]   ;;  %s1716_s6 = inlined_call_operand.hbm [shape: f32[36,96], index: 6, kind: input, shape index: {}]   ;;  %s1717_s7 = inlined_call_operand.hbm [shape: f32[1,32,96], index: 7, kind: input, shape index: {}]   ;;  %s1718_s8 = inlined_call_operand.vmem [shape: f32[2,32,96], index: 8, kind: input, shape index: {}]   ;;  %s1719_s9 = inlined_call_operand.vmem [shape: f32[2,2,96], index: 9, kind: input, shape index: {}]   ;;  %s1720_s10 = inlined_call_operand.vmem [shape: f32[68,128], index: 10, kind: input, shape index: {}]   ;;  %s1721_s11 = inlined_call_operand.vmem [shape: f32[1,128], index: 11, kind: input, shape index: {}]   ;;  %s1722_s12 = inlined_call_operand.vmem [shape: f32[2,8,32], index: 12, kind: output, shape index: {0}, may-alias: {3,12}]   ;;  %s1723_s13 = inlined_call_operand.vmem [shape: f32[8,128], index: 13, kind: output, shape index: {1}]  }
   0x1   :  { %20 = vsyncpa [#allocation5], 0 }
   0x2   :  { %21 = vsyncpa [#allocation8], 0  ;;  %s1340_s25 = smov [#allocation4]   ;;  %s1246_s29 = scalar_lea.hbm %s1712_s2, 1024 }
   0x3   :  { %s39_s26 = sshll.u32 %s1340_s25, 4  ;;  %p1247_p0 = scmp.ne.s32.totalorder %s1712_s2, %s1246_s29  ;;  %s40_s26 = int_to_ptr.vmem [resolvable:$true] %s39_s26 }
   0x4   :  { %p1250_p1 = scmp.lt.u32.totalorder %s1246_s29, %s1712_s2 }
   0x6   :  { %p1252_p2 = pnand %p1250_p1, %p1247_p0 }
   0x8   :  { %1255 = shalt.err (!%p1252_p2)
}
   0x9   :  { %s1256_s17 = scalar_lea.vmem %s40_s26, 1024  ;;  %p1261_p4 = scmp.lt.s32.totalorder %s40_s26, %s40_s26 }
   0xa   :  { %p1257_p3 = scmp.ne.s32.totalorder %s40_s26, %s1256_s17  ;;  %p1262_p5 = scmp.lt.s32.totalorder %s1256_s17, %s1256_s17 }
   0xc   :  { %p1263_p6 = por %p1262_p5, %p1261_p4 }
   0xe   :  { %p1264_p7 = pnand %p1263_p6, %p1257_p3 }
  0x10   :  { %1267 = shalt.err (!%p1264_p7)
}
  0x11   :  { %s1341_s18 = smov 128   ;;  %s1342_s19 = smov 8  }
  0x12   :  { %45 = dma.hbm_to_vmem [thread:$0]  %s1712_s2, 1024, %s40_s26, [#allocation5], %s1341_s18, %s1341_s18, %s1342_s19  }
  0x13   :  { %s1343_s22 = smov [#allocation2]   ;;  %s1344_s24 = smov [#allocation6]  }
  0x14   :  { %s30_s23 = sshll.u32 %s1343_s22, 4  ;;  %s57_s25 = sshll.u32 %s1344_s24, 4  ;;  %s31_s23 = int_to_ptr.vmem [resolvable:$true] %s30_s23  ;;  %s58_s25 = int_to_ptr.vmem [resolvable:$true] %s57_s25 }
  0x15   :  { %s1268_s29 = scalar_lea.hbm %s1711_s1, 128 }
  0x16   :  { %p1269_p8 = scmp.ne.s32.totalorder %s1711_s1, %s1268_s29  ;;  %p1272_p9 = scmp.lt.u32.totalorder %s1268_s29, %s1711_s1 }
  0x18   :  { %p1274_p10 = pnand %p1272_p9, %p1269_p8 }
  0x1a   :  { %1277 = shalt.err (!%p1274_p10)
}
  0x1b   :  { %s1278_s2 = scalar_lea.vmem %s31_s23, 128  ;;  %p1283_p12 = scmp.lt.s32.totalorder %s31_s23, %s31_s23 }
  0x1c   :  { %p1279_p11 = scmp.ne.s32.totalorder %s31_s23, %s1278_s2  ;;  %p1284_p13 = scmp.lt.s32.totalorder %s1278_s2, %s1278_s2 }
  0x1e   :  { %p1285_p0 = por %p1284_p13, %p1283_p12 }
  0x20   :  { %p1286_p1 = pnand %p1285_p0, %p1279_p11 }
  0x22   :  { %1289 = shalt.err (!%p1286_p1)
}
  0x23   :  { %33 = dma.hbm_to_vmem [thread:$0]  %s1711_s1, 128, %s31_s23, [#allocation3]  }
  0x24   :  { %s1290_s22 = scalar_lea.hbm %s1716_s6, 640 }
  0x25   :  { %p1291_p2 = scmp.ne.s32.totalorder %s1716_s6, %s1290_s22  ;;  %p1294_p3 = scmp.lt.u32.totalorder %s1290_s22, %s1716_s6 }
  0x27   :  { %p1296_p4 = pnand %p1294_p3, %p1291_p2 }
  0x29   :  { %1299 = shalt.err (!%p1296_p4)
}
  0x2a   :  { %s1300_s30 = scalar_lea.vmem %s58_s25, 640  ;;  %p1305_p6 = scmp.lt.s32.totalorder %s58_s25, %s58_s25 }
  0x2b   :  { %p1301_p5 = scmp.ne.s32.totalorder %s58_s25, %s1300_s30  ;;  %p1306_p7 = scmp.lt.s32.totalorder %s1300_s30, %s1300_s30 }
  0x2d   :  { %p1307_p8 = por %p1306_p7, %p1305_p6 }
  0x2f   :  { %p1308_p9 = pnand %p1307_p8, %p1301_p5 }
  0x31   :  { %1311 = shalt.err (!%p1308_p9)
}
  0x32   :  { %63 = dma.hbm_to_vmem [thread:$0]  %s1716_s6, 640, %s58_s25, [#allocation5], %s1341_s18, %s1341_s18, %s1342_s19  }
  0x33   :  { %s1345_s14 = smov [#allocation7]   ;;  %s1312_s26 = scalar_lea.hbm %s1717_s7, 512 }
  0x34   :  { %s69_s15 = sshll.u32 %s1345_s14, 4  ;;  %p1313_p10 = scmp.ne.s32.totalorder %s1717_s7, %s1312_s26  ;;  %s70_s15 = int_to_ptr.vmem [resolvable:$true] %s69_s15 }
  0x35   :  { %p1316_p11 = scmp.lt.u32.totalorder %s1312_s26, %s1717_s7 }
  0x37   :  { %p1318_p12 = pnand %p1316_p11, %p1313_p10 }
  0x39   :  { %1321 = shalt.err (!%p1318_p12)
}
  0x3a   :  { %s1322_s24 = scalar_lea.vmem %s70_s15, 512  ;;  %p1327_p0 = scmp.lt.s32.totalorder %s70_s15, %s70_s15 }
  0x3b   :  { %p1323_p13 = scmp.ne.s32.totalorder %s70_s15, %s1322_s24  ;;  %p1328_p1 = scmp.lt.s32.totalorder %s1322_s24, %s1322_s24 }
  0x3d   :  { %p1329_p2 = por %p1328_p1, %p1327_p0 }
  0x3f   :  { %p1330_p3 = pnand %p1329_p2, %p1323_p13 }
  0x41   :  { %1333 = shalt.err (!%p1330_p3)
}
  0x42   :  { %75 = dma.hbm_to_vmem [thread:$0]  %s1717_s7, 512, %s70_s15, [#allocation8], %s1341_s18, %s1341_s18, %s1342_s19  }
  0x43   :  { %1334 = dma.done.wait [#allocation3], 128  }
  0x44   :  { %1335 = vsyncadd [#allocation3], 4294967168 }
  0x45   :  { %1336 = dma.done.wait [#allocation5], 1664  }
  0x46   :  { %1337 = vsyncadd [#allocation5], 4294965632 }
  0x47   :  { %1338 = dma.done.wait [#allocation8], 512  }
  0x48   :  { %1339 = vsyncadd [#allocation8], 4294966784  ;;  %v1346_v0 = vmov 0.0|0.0   ;;  %vm1347_vm0 = vmmov 0   ;;  %v1348_v1 = vmov 0.0   ;;  %v108_v2 = vld [vmem:[%s1714_s4] sm:$0xff] }
  0x49   :  { %1137 = vmatprep.subr.bf16.mxu1 %v1346_v0  ;;  %1047 = vmatprep.mubr.msk.f32.mxu1 %vm1347_vm0, %v1348_v1  ;;  %v109_v3 = vld [vmem:[%s1714_s4 + $0x8] sm:$0xff]  ;;  %v110_v4 = vld [vmem:[%s1714_s4 + $0x10] sm:$0xff]  ;;  %v111_v6 = vld [vmem:[%s1714_s4 + $0x18] sm:$0xff]  ;;  %vm122_vm1 = vcmask 261120   ;;  %vm467_vm2 = vcmask 1043456   ;;  %s1349_s1 = smov 4  }
  0x4a   :  { %1151 = vmatprep.subr.bf16.mxu0 %v1346_v0  ;;  %1080 = vmatprep.mubr.msk.f32.mxu0 %vm1347_vm0, %v1348_v1  ;;  %v1138_v5 = vpack.c.bf16 %v109_v3, %v108_v2  ;;  %v112_v7 = vld [vmem:[%s1714_s4 + $0x20] sm:$0xff]  ;;  %v113_v8 = vld [vmem:[%s1714_s4 + $0x28] sm:$0xff]  ;;  %v1141_v9 = vpack.c.bf16 %v111_v6, %v110_v4  ;;  %v114_v11 = vld [vmem:[%s1714_s4 + $0x30] sm:$0xff]  ;;  %s1350_s23 = smov 32   ;;  %s1351_s16 = smov 64   ;;  %vm451_vm3 = vcmask 31744  }
  0x4b   :  { %v1143_v10 = vpack.c.bf16 %v113_v8, %v112_v7  ;;  %v115_v12 = vld [vmem:[%s1714_s4 + $0x38] sm:$0xff]  ;;  %v97_v13 = vld [vmem:[#allocation2] sm:$0xff]  ;;  %v1511_v15 = vld [vmem:[#allocation4] sm:$0xff]  ;;  %vm463_vm4 = vcmask 293888   ;;  %vm875_vm5 = vcmask 556032  }
  0x4c   :  { %1139 = vmatpush3.bf16.msra.mxu1 %v1138_v5  ;;  %v1147_v14 = vpack.c.bf16 %v115_v12, %v114_v11  ;;  %v1516_v16 = vld [vmem:[#allocation4 + $0x8] sm:$0xff]  ;;  %v1518_v17 = vld [vmem:[#allocation4 + $0x10] sm:$0xff]  ;;  %v1525_v18 = vld [vmem:[#allocation4 + $0x18] sm:$0xff] }
  0x4d   :  { %1140 = vmatprep.subr.bf16.mxu1 %v1346_v0  ;;  %v1527_v19 = vld [vmem:[#allocation4 + $0x20] sm:$0xff]  ;;  %v1533_v20 = vld [vmem:[#allocation4 + $0x28] sm:$0xff]  ;;  %v1535_v21 = vld [vmem:[#allocation4 + $0x30] sm:$0xff] }
  0x4e   :  { %v1541_v22 = vld [vmem:[#allocation4 + $0x38] sm:$0xff]  ;;  %v542_v7 = vld [vmem:[%s1718_s8 + $0x8] sm:$0xff]  ;;  %v543_v8 = vld [vmem:[%s1718_s8 + $0x10] sm:$0xff] }
  0x4f   :  { %v964_v25 = vld [vmem:[%s1715_s5] ss:$0 sm:$0xff]  ;;  %v974_v39 = vld [vmem:[%s1715_s5 + $0x1] ss:$0 sm:$0xff]  ;;  %v453_v11 = vld [vmem:[#allocation6] sm:$0xff] }
  0x50   :  { %1142 = vmatpush3.bf16.msra.mxu1 %v1141_v9  ;;  %v541_v6 = vld [vmem:[%s1718_s8] sm:$0xff]  ;;  %v454_v12 = vld [vmem:[#allocation6 + $0x8] sm:$0xff] }
  0x51   :  { %1144 = vmatprep.subr.bf16.mxu1 %v1143_v10  ;;  %v1158_v9 = vpack.c.bf16 %v542_v7, %v541_v6 }
  0x53   :  { %1048 = vmatmul.mubr.msk.f32.vlgmr.msra.gmra.mrb[0].mxu1 %vm122_vm1, %v97_v13  ;;  %v455_v13 = vld [vmem:[#allocation6 + $0x10] sm:$0xff] }
  0x54   :  { %1146 = vmatpush3.bf16.msra.mxu1 %v1143_v10  ;;  %1058 = vmatprep.mubr.msk.f32.mxu1 %vm122_vm1, %v1511_v15  ;;  %v544_v10 = vld [vmem:[%s1718_s8 + $0x18] sm:$0xff] }
  0x55   :  { %1148 = vmatprep.subr.bf16.mxu1 %v1147_v14 }
  0x58   :  { %1150 = vmatpush3.bf16.msra.mxu1 %v1147_v14  ;;  %v456_v14 = vld [vmem:[#allocation6 + $0x18] sm:$0xff] }
  0x59   :  { %1157 = vmatprep.subr.bf16.mxu1 %v1346_v0 }
  0x5b   :  { %1059 = vmatmul.mubr.msk.f32.vlgmr.msra.gmra.mrb[2].mxu1 %vm122_vm1, %v1516_v16 }
  0x5c   :  { %1061 = vmatprep.mubr.msk.f32.mxu1 %vm122_vm1, %v1518_v17  ;;  %1159 = vmatpush3.bf16.msra.mxu1 %v1158_v9 }
  0x5d   :  { %1160 = vmatprep.subr.bf16.mxu1 %v1346_v0 }
  0x5f   :  { %1062 = vmatmul.mubr.msk.f32.gmra.mrb[4].mxu1 %vm122_vm1, %v1525_v18 }
  0x60   :  { %1064 = vmatprep.mubr.msk.f32.mxu1 %vm122_vm1, %v1527_v19 }
  0x63   :  { %1065 = vmatmul.mubr.msk.f32.gmra.mrb[6].mxu1 %vm122_vm1, %v1533_v20 }
  0x64   :  { %1067 = vmatprep.mubr.msk.f32.mxu1 %vm122_vm1, %v1535_v21 }
  0x67   :  { %1068 = vmatmul.mubr.msk.f32.gmra.mrb[8].mxu1 %vm122_vm1, %v1541_v22 }
  0x68   :  { %1091 = vmatprep.mubr.msk.f32.mxu1 %vm1347_vm0, %v1348_v1 }
 0x126   :  { %v192_v23 = vpop.f32.mrb[0].mxu1 }
 0x127   :  { %v1049_v24 = vpop.f32.mrb[1].mxu1  ;;  %v193_v26 = vadd.f32 %v964_v25, %v192_v23  ;;  %v1161_v23 = vpack.c.bf16 %v544_v10, %v543_v8  ;;  %v1155_v25 = vpack.c.bf16 %v456_v14, %v455_v13 }
 0x128   :  { %v1152_v24 = vpack.c.bf16 %v454_v12, %v453_v11 }
 0x129   :  { %1162 = vmatpush3.bf16.msra.mxu1 %v1161_v23 }
 0x12a   :  { %1153 = vmatpush3.bf16.msra.mxu0 %v1152_v24  ;;  %1169 = vmatprep.subr.bf16.mxu1 %v1346_v0 }
 0x12b   :  { %1154 = vmatprep.subr.bf16.mxu0 %v1346_v0 }
 0x12e   :  { %v1060_v27 = vpop.f32.mrb[2].mxu1  ;;  %1156 = vmatpush3.bf16.msra.mxu0 %v1155_v25 }
 0x12f   :  { %v326_v28 = vadd.f32 %v1060_v27, %v193_v26  ;;  %v286_v29 = vpop.f32.mrb[3].mxu1  ;;  %1078 = vmatprep.subr.mxu0 %v1348_v1 }
 0x130   :  { %v325_v30 = vadd.f32 %v286_v29, %v193_v26 }
 0x131   :  { %1200 = vtanh.f32 %v326_v28 }
 0x132   :  { %1202 = vtanh.f32 %v325_v30  ;;  %v1063_v31 = vpop.f32.mrb[4].mxu1 }
 0x133   :  { %v328_v32 = vadd.f32 %v1063_v31, %v193_v26  ;;  %v296_v33 = vpop.f32.mrb[5].mxu1 }
 0x134   :  { %v327_v34 = vadd.f32 %v296_v33, %v193_v26 }
 0x135   :  { %1204 = vtanh.f32 %v328_v32 }
 0x136   :  { %1206 = vtanh.f32 %v327_v34  ;;  %v1066_v35 = vpop.f32.mrb[6].mxu1 }
 0x137   :  { %v330_v36 = vadd.f32 %v1066_v35, %v193_v26  ;;  %v306_v37 = vpop.f32.mrb[7].mxu1 }
 0x138   :  { %v329_v38 = vadd.f32 %v306_v37, %v193_v26 }
 0x139   :  { %1208 = vtanh.f32 %v330_v36 }
 0x13a   :  { %1210 = vtanh.f32 %v329_v38  ;;  %v1069_v40 = vpop.f32.mrb[8].mxu1 }
 0x13b   :  { %v1201_v41 = vpop.eup %1200  ;;  %v332_v42 = vadd.f32 %v1069_v40, %v193_v26  ;;  %v316_v43 = vpop.f32.mrb[9].mxu1 }
 0x13c   :  { %v1203_v44 = vpop.eup %1202  ;;  %v331_v45 = vadd.f32 %v316_v43, %v193_v26  ;;  %v346_v46 = vmul.f32 %v1201_v41, %v974_v39  ;;  %v1578_v26 = vld [vmem:[%s1713_s3] sm:$0xff] }
 0x13d   :  { %1212 = vtanh.f32 %v332_v42  ;;  %v345_v48 = vmul.f32 %v1203_v44, %v974_v39  ;;  %1092 = vmatmul.mubr.msk.f32.vlgmr.msra.gmra.mrb[10].mxu1 %vm122_vm1, %v1578_v26 }
 0x13e   :  { %1214 = vtanh.f32 %v331_v45  ;;  %v356_v47 = vsel %vm122_vm1, %v346_v46, 0.0  ;;  %1113 = vmatprep.mubr.msk.f32.mxu1 %vm1347_vm0, %v1348_v1 }
 0x13f   :  { %v1205_v49 = vpop.eup %1204  ;;  %357 = vadd.xlane.f32.xlu0 %v356_v47  ;;  %v353_v52 = vsel %vm122_vm1, %v345_v48, 0.0 }
 0x140   :  { %v1207_v50 = vpop.eup %1206  ;;  %v348_v51 = vmul.f32 %v1205_v49, %v974_v39 }
 0x141   :  { %v347_v54 = vmul.f32 %v1207_v50, %v974_v39 }
 0x142   :  { %v362_v53 = vsel %vm122_vm1, %v348_v51, 0.0 }
 0x143   :  { %v1209_v55 = vpop.eup %1208  ;;  %354 = vadd.xlane.f32.xlu0 %v353_v52  ;;  %363 = vadd.xlane.f32.xlu1 %v362_v53  ;;  %v359_v58 = vsel %vm122_vm1, %v347_v54, 0.0 }
 0x144   :  { %v1211_v56 = vpop.eup %1210  ;;  %v350_v59 = vmul.f32 %v1209_v55, %v974_v39 }
 0x145   :  { %v349_v57 = vmul.f32 %v1211_v56, %v974_v39 }
 0x146   :  { %v368_v2 = vsel %vm122_vm1, %v350_v59, 0.0 }
 0x147   :  { %v1213_v60 = vpop.eup %1212  ;;  %360 = vadd.xlane.f32.xlu1 %v359_v58  ;;  %v365_v61 = vsel %vm122_vm1, %v349_v57, 0.0 }
 0x148   :  { %v1215_v62 = vpop.eup %1214  ;;  %366 = vadd.xlane.f32.xlu0 %v365_v61  ;;  %v352_v3 = vmul.f32 %v1213_v60, %v974_v39 }
 0x149   :  { %v351_v63 = vmul.f32 %v1215_v62, %v974_v39 }
 0x14a   :  { %v374_v5 = vsel %vm122_vm1, %v352_v3, 0.0 }
 0x14b   :  { %369 = vadd.xlane.f32.xlu1 %v368_v2  ;;  %v371_v4 = vsel %vm122_vm1, %v351_v63, 0.0 }
 0x14c   :  { %372 = vadd.xlane.f32.xlu0 %v371_v4 }
 0x14f   :  { %375 = vadd.xlane.f32.xlu1 %v374_v5 }
 0x1cc   :  { %v358_v27 = vpop.xlane.xlu0 %357 }
 0x1d0   :  { %v355_v28 = vpop.xlane.xlu0 %354  ;;  %v364_v29 = vpop.xlane.xlu1 %363 }
 0x1d4   :  { %v361_v30 = vpop.xlane.xlu1 %360 }
 0x1d5   :  { %v367_v31 = vpop.xlane.xlu0 %366 }
 0x1d6   :  { %v377_v36 = vmax.f32 %v355_v28, %v367_v31 }
 0x1d8   :  { %v370_v32 = vpop.xlane.xlu1 %369 }
 0x1d9   :  { %v373_v33 = vpop.xlane.xlu0 %372  ;;  %v378_v34 = vmax.f32 %v358_v27, %v370_v32 }
 0x1da   :  { %v379_v37 = vmax.f32 %v361_v30, %v373_v33 }
 0x1db   :  { %v381_v39 = vmax.f32 %v377_v36, %v378_v34 }
 0x1dc   :  { %v376_v35 = vpop.xlane.xlu1 %375 }
 0x1dd   :  { %v380_v38 = vmax.f32 %v364_v29, %v376_v35 }
 0x1df   :  { %v382_v40 = vmax.f32 %v379_v37, %v380_v38  ;;  %v457_v37 = vld [vmem:[#allocation6 + $0x20] sm:$0xf] }
 0x1e0   :  { %1079 = vmatpush3.msk.msra.mxu0 %vm467_vm2, %v457_v37 }
 0x1e1   :  { %v383_v41 = vmax.f32 %v381_v39, %v382_v40  ;;  %1163 = vmatprep.subr.bf16.mxu0 %v1346_v0 }
 0x1e3   :  { %v384_v42 = vsub.f32 %v355_v28, %v383_v41  ;;  %v385_v43 = vsub.f32 %v358_v27, %v383_v41  ;;  %v386_v44 = vsub.f32 %v361_v30, %v383_v41  ;;  %v387_v45 = vsub.f32 %v364_v29, %v383_v41 }
 0x1e4   :  { %v388_v48 = vsub.f32 %v367_v31, %v383_v41  ;;  %v389_v50 = vsub.f32 %v370_v32, %v383_v41  ;;  %v390_v52 = vsub.f32 %v373_v33, %v383_v41  ;;  %v391_v54 = vsub.f32 %v376_v35, %v383_v41 }
 0x1e5   :  { %v392_v46 = vmul.f32 1.442695, %v384_v42  ;;  %v394_v47 = vmul.f32 1.442695, %v385_v43  ;;  %v396_v49 = vmul.f32 1.442695, %v386_v44 }
 0x1e6   :  { %v398_v51 = vmul.f32 1.442695, %v387_v45  ;;  %v400_v53 = vmul.f32 1.442695, %v388_v48  ;;  %v402_v55 = vmul.f32 1.442695, %v389_v50 }
 0x1e7   :  { %1216 = vpow2.f32 %v392_v46  ;;  %v404_v56 = vmul.f32 1.442695, %v390_v52  ;;  %v406_v57 = vmul.f32 1.442695, %v391_v54  ;;  %v458_v48 = vld [vmem:[%s1719_s9] sm:$0x3] }
 0x1e8   :  { %1218 = vpow2.f32 %v394_v47 }
 0x1e9   :  { %1220 = vpow2.f32 %v396_v49 }
 0x1ea   :  { %1222 = vpow2.f32 %v398_v51 }
 0x1eb   :  { %1224 = vpow2.f32 %v400_v53 }
 0x1ec   :  { %1226 = vpow2.f32 %v402_v55 }
 0x1ed   :  { %1228 = vpow2.f32 %v404_v56 }
 0x1ee   :  { %1230 = vpow2.f32 %v406_v57 }
 0x1f1   :  { %v1217_v58 = vpop.eup %1216 }
 0x1f2   :  { %v1219_v59 = vpop.eup %1218 }
 0x1f3   :  { %v408_v60 = vadd.f32 %v1219_v59, %v1217_v58  ;;  %v1221_v61 = vpop.eup %1220 }
 0x1f4   :  { %v1223_v63 = vpop.eup %1222 }
 0x1f5   :  { %v409_v62 = vadd.f32 %v1221_v61, %v408_v60  ;;  %v1225_v3 = vpop.eup %1224 }
 0x1f6   :  { %v1227_v5 = vpop.eup %1226 }
 0x1f7   :  { %v410_v2 = vadd.f32 %v1223_v63, %v409_v62  ;;  %v1229_v7 = vpop.eup %1228 }
 0x1f8   :  { %v1231_v9 = vpop.eup %1230 }
 0x1f9   :  { %v411_v4 = vadd.f32 %v1225_v3, %v410_v2 }
 0x1fb   :  { %v412_v6 = vadd.f32 %v1227_v5, %v411_v4 }
 0x1fd   :  { %v413_v8 = vadd.f32 %v1229_v7, %v412_v6 }
 0x1ff   :  { %v414_v10 = vadd.f32 %v1231_v9, %v413_v8  ;;  %v982_v8 = vld [vmem:[%s1718_s8 + $0x28] sm:$0xff] }
 0x201   :  { %1232 = vrcp.f32 %v414_v10 }
 0x20b   :  { %v1233_v11 = vpop.eup %1232 }
 0x20c   :  { %v416_v12 = vmul.f32 %v1233_v11, %v1217_v58  ;;  %v417_v13 = vmul.f32 %v1233_v11, %v1219_v59  ;;  %v418_v14 = vmul.f32 %v1233_v11, %v1221_v61  ;;  %v419_v23 = vmul.f32 %v1233_v11, %v1223_v63 }
 0x20d   :  { %v420_v24 = vmul.f32 %v1233_v11, %v1225_v3  ;;  %v421_v29 = vmul.f32 %v1233_v11, %v1227_v5  ;;  %v422_v34 = vmul.f32 %v1233_v11, %v1229_v7  ;;  %v981_v7 = vld [vmem:[%s1718_s8 + $0x20] sm:$0xff] }
 0x20e   :  { %v424_v25 = vmul.f32 %v416_v12, %v1511_v15  ;;  %v425_v27 = vmul.f32 %v417_v13, %v1516_v16  ;;  %v426_v28 = vmul.f32 %v418_v14, %v1518_v17  ;;  %v427_v30 = vmul.f32 %v419_v23, %v1525_v18  ;;  %v656_v12 = vld [vmem:[#allocation7] sm:$0xff]  ;;  %v657_v13 = vld [vmem:[#allocation7 + $0x8] sm:$0xff]  ;;  %v658_v14 = vld [vmem:[#allocation7 + $0x10] sm:$0xff] }
 0x20f   :  { %v428_v35 = vmul.f32 %v420_v24, %v1527_v19  ;;  %v423_v16 = vmul.f32 %v1233_v11, %v1231_v9  ;;  %v429_v17 = vmul.f32 %v421_v29, %v1533_v20  ;;  %v430_v39 = vmul.f32 %v422_v34, %v1535_v21  ;;  %v983_v9 = vld [vmem:[%s1718_s8 + $0x30] sm:$0xff]  ;;  %v984_v11 = vld [vmem:[%s1718_s8 + $0x38] sm:$0xff]  ;;  %v659_v23 = vld [vmem:[#allocation7 + $0x18] sm:$0xff]  ;;  %s1352_s8 = smov 96  }
 0x210   :  { %v432_v31 = vsel %vm122_vm1, %v424_v25, 0.0  ;;  %v433_v32 = vsel %vm122_vm1, %v425_v27, 0.0  ;;  %v435_v36 = vsel %vm122_vm1, %v426_v28, 0.0  ;;  %v437_v18 = vsel %vm122_vm1, %v427_v30, 0.0  ;;  %v618_v50 = vpop.f32.mrb[10].mxu1  ;;  %v107_v28 = vld [vmem:[%s1713_s3 + $0x8] sm:$0xff] }
 0x211   :  { %v434_v33 = vadd.f32 %v433_v32, %v432_v31  ;;  %v439_v40 = vsel %vm122_vm1, %v428_v35, 0.0  ;;  %v431_v41 = vmul.f32 %v423_v16, %v1541_v22  ;;  %v441_v42 = vsel %vm122_vm1, %v429_v17, 0.0  ;;  %v1093_v52 = vpop.f32.mrb[11].mxu1 }
 0x212   :  { %v443_v44 = vsel %vm122_vm1, %v430_v39, 0.0  ;;  %v459_v21 = vlaneseq  ;;  %v1170_v10 = vpack.c.bf16 %v982_v8, %v981_v7  ;;  %v1173_v24 = vpack.c.bf16 %v984_v11, %v983_v9 }
 0x213   :  { %v436_v15 = vadd.f32 %v435_v36, %v434_v33  ;;  %v445_v20 = vsel %vm122_vm1, %v431_v41, 0.0  ;;  %v1164_v25 = vpack.c.bf16 %v657_v13, %v656_v12  ;;  %v1167_v27 = vpack.c.bf16 %v659_v23, %v658_v14  ;;  %v979_v36 = vld [vmem:[%s1719_s9 + $0x2] sm:$0x3] }
 0x214   :  { %v1607_v47 = vshrl.u32 %v459_v21, 7  ;;  %1171 = vmatpush3.bf16.msra.mxu1 %v1170_v10 }
 0x215   :  { %v438_v38 = vadd.f32 %v437_v18, %v436_v15  ;;  %1172 = vmatprep.subr.bf16.mxu1 %v1346_v0 }
 0x216   :  { %v547_v22 = vsub.s32 1, %v1607_v47  ;;  %v461_v55 = vsub.s32 0, %v1607_v47 }
 0x217   :  { %v440_v19 = vadd.f32 %v439_v40, %v438_v38 }
 0x218   :  { %v548_v49 = vrot.slane %v458_v48, %v547_v22  ;;  %v462_v56 = vrot.slane %v458_v48, %v461_v55  ;;  %1174 = vmatpush3.bf16.msra.mxu1 %v1173_v24  ;;  %v746_v37 = vrot.slane %v979_v36, %v547_v22  ;;  %v665_v38 = vrot.slane %v979_v36, %v461_v55  ;;  %v859_v22 = vld [vmem:[%s1720_s10] sm:$0xff]  ;;  %v860_v48 = vld [vmem:[%s1720_s10 + $0x8] sm:$0xff] }
 0x219   :  { %v442_v43 = vadd.f32 %v441_v42, %v440_v19 }
 0x21a   :  { %v619_v51 = vadd.f32 %v618_v50, %v548_v49  ;;  %v861_v49 = vld [vmem:[%s1720_s10 + $0x10] sm:$0xff]  ;;  %v1176_v50 = vpack.c.bf16 %v860_v48, %v859_v22 }
 0x21b   :  { %v444_v45 = vadd.f32 %v443_v44, %v442_v43  ;;  %1114 = vmatmul.mubr.msk.f32.vlgmr.msra.gmra.mrb[12].mxu1 %vm122_vm1, %v107_v28 }
 0x21c   :  { %630 = vrot.lane.b32.xlu1 %v619_v51, %s1351_s16 }
 0x21d   :  { %v446_v46 = vadd.f32 %v445_v20, %v444_v45 }
 0x21f   :  { %448 = vrot.lane.b32.xlu0 %v446_v46, %s1349_s1 }
 0x223   :  { %646 = vrot.lane.b32.xlu0 %v1578_v26, %s1350_s23  ;;  %v96_v26 = vld [vmem:[%s1710_s0] sm:$0xff] }
 0x28e   :  { %v631_v2 = vpop.permute.xlu1 %630 }
 0x291   :  { %v449_v53 = vpop.permute.xlu0 %448 }
 0x292   :  { %v1619_v54 = vsel %vm451_vm3, %v96_v26, %v449_v53  ;;  %v863_v26 = vld [vmem:[%s1720_s10 + $0x20] sm:$0xff]  ;;  %v864_v53 = vld [vmem:[%s1720_s10 + $0x28] sm:$0xff] }
 0x293   :  { %1081 = vmatmul.mubr.msk.f32.vlgmr.msra.gmra.mrb[0].mxu0 %vm463_vm4, %v1619_v54  ;;  %v1182_v55 = vpack.c.bf16 %v864_v53, %v863_v26 }
 0x294   :  { %1102 = vmatprep.mubr.msk.f32.mxu0 %vm1347_vm0, %v1348_v1  ;;  %1165 = vmatpush3.bf16.msra.mxu0 %v1164_v25 }
 0x295   :  { %1166 = vmatprep.subr.bf16.mxu0 %v1346_v0  ;;  %v647_v30 = vpop.permute.xlu0 %646 }
 0x298   :  { %1168 = vmatpush3.bf16.msra.mxu0 %v1167_v27 }
 0x299   :  { %1175 = vmatprep.subr.bf16.mxu0 %v1346_v0 }
 0x2ee   :  { %v816_v15 = vpop.f32.mrb[12].mxu1 }
 0x2ef   :  { %v817_v16 = vadd.f32 %v816_v15, %v746_v37  ;;  %v1115_v17 = vpop.f32.mrb[13].mxu1 }
 0x2f1   :  { %828 = vrot.lane.b32.xlu0 %v817_v16, %s1351_s16 }
 0x363   :  { %v829_v45 = vpop.permute.xlu0 %828 }
 0x366   :  { %v537_v57 = vpop.f32.mrb[0].mxu0 }
 0x367   :  { %v538_v58 = vadd.f32 %v537_v57, %v462_v56  ;;  %v1082_v59 = vpop.f32.mrb[1].mxu0  ;;  %v865_v57 = vld [vmem:[%s1720_s10 + $0x30] sm:$0xff] }
 0x369   :  { %v622_v60 = vadd.f32 %v619_v51, %v538_v58  ;;  %v862_v51 = vld [vmem:[%s1720_s10 + $0x18] sm:$0xff] }
 0x36a   :  { %v1179_v52 = vpack.c.bf16 %v862_v51, %v861_v49 }
 0x36b   :  { %v978_v61 = vmul.f32 -1.442695, %v622_v60  ;;  %v867_v60 = vld [vmem:[%s1720_s10 + $0x40] sm:$0xf] }
 0x36d   :  { %1234 = vpow2.f32 %v978_v61 }
 0x377   :  { %v1235_v62 = vpop.eup %1234 }
 0x378   :  { %v626_v63 = vadd.f32 1.0, %v1235_v62 }
 0x37a   :  { %1236 = vrcp.f32 %v626_v63 }
 0x384   :  { %v1237_v3 = vpop.eup %1236 }
 0x385   :  { %v633_v4 = vmul.f32 %v1237_v3, %v631_v2  ;;  %v640_v31 = vsub.f32 1.0, %v1237_v3  ;;  %v649_v33 = vmul.f32 %v1237_v3, %v647_v30 }
 0x387   :  { %635 = vrot.lane.b32.xlu1 %v633_v4, %s1351_s16 }
 0x3f9   :  { %v636_v5 = vpop.permute.xlu1 %635 }
 0x3fa   :  { %v638_v6 = vadd.f32 %v636_v5, %v538_v58  ;;  %v866_v58 = vld [vmem:[%s1720_s10 + $0x38] sm:$0xff] }
 0x3fb   :  { %v1185_v59 = vpack.c.bf16 %v866_v58, %v865_v57 }
 0x3fc   :  { %1238 = vtanh.f32 %v638_v6  ;;  %v988_v6 = vld [vmem:[%s1721_s11] ss:$0 sm:$0xff] }
 0x406   :  { %v1239_v29 = vpop.eup %1238 }
 0x407   :  { %642 = vrot.lane.b32.xlu1 %v1239_v29, %s1352_s8 }
 0x479   :  { %v643_v32 = vpop.permute.xlu1 %642 }
 0x47a   :  { %v645_v34 = vmul.f32 %v643_v32, %v640_v31 }
 0x47c   :  { %v650_v35 = vadd.f32 %v649_v33, %v645_v34 }
 0x47e   :  { %652 = vrot.lane.b32.xlu1 %v650_v35, %s1352_s8 }
 0x4f0   :  { %v653_v18 = vpop.permute.xlu1 %652 }
 0x4f1   :  { %655 = vst.msk [vmem:[%s1722_s12] sm:$0xff] %vm122_vm1, %v653_v18  ;;  %1103 = vmatmul.mubr.msk.f32.vlgmr.msra.gmra.mrb[2].mxu0 %vm122_vm1, %v653_v18 }
 0x4f2   :  { %1134 = vmatprep.mubr.msk.f32.mxu0 %vm1347_vm0, %v1348_v1  ;;  %1177 = vmatpush3.bf16.msra.mxu0 %v1176_v50 }
 0x4f3   :  { %1178 = vmatprep.subr.bf16.mxu0 %v1346_v0 }
 0x4f6   :  { %1180 = vmatpush3.bf16.msra.mxu0 %v1179_v52 }
 0x4f7   :  { %1181 = vmatprep.subr.bf16.mxu0 %v1346_v0 }
 0x4fa   :  { %1183 = vmatpush3.bf16.msra.mxu0 %v1182_v55 }
 0x4fb   :  { %1184 = vmatprep.subr.bf16.mxu0 %v1346_v0 }
 0x4fe   :  { %1186 = vmatpush3.bf16.msra.mxu0 %v1185_v59 }
 0x4ff   :  { %1132 = vmatprep.subr.mxu0 %v1348_v1 }
 0x502   :  { %1133 = vmatpush3.msk.msra.mxu0 %vm467_vm2, %v867_v60 }
 0x5c4   :  { %v734_v39 = vpop.f32.mrb[2].mxu0 }
 0x5c5   :  { %v735_v40 = vadd.f32 %v734_v39, %v665_v38  ;;  %v1104_v19 = vpop.f32.mrb[3].mxu0 }
 0x5c7   :  { %v820_v41 = vadd.f32 %v817_v16, %v735_v40 }
 0x5c9   :  { %v986_v42 = vmul.f32 -1.442695, %v820_v41 }
 0x5cb   :  { %1240 = vpow2.f32 %v986_v42 }
 0x5d5   :  { %v1241_v43 = vpop.eup %1240 }
 0x5d6   :  { %v824_v44 = vadd.f32 1.0, %v1241_v43 }
 0x5d8   :  { %1242 = vrcp.f32 %v824_v44 }
 0x5e2   :  { %v1243_v20 = vpop.eup %1242 }
 0x5e3   :  { %v831_v46 = vmul.f32 %v1243_v20, %v829_v45  ;;  %v838_v62 = vsub.f32 1.0, %v1243_v20 }
 0x5e5   :  { %833 = vrot.lane.b32.xlu1 %v831_v46, %s1351_s16 }
 0x5e9   :  { %844 = vrot.lane.b32.xlu1 %v107_v28, %s1350_s23 }
 0x657   :  { %v834_v21 = vpop.permute.xlu1 %833 }
 0x658   :  { %v836_v47 = vadd.f32 %v834_v21, %v735_v40 }
 0x65a   :  { %1244 = vtanh.f32 %v836_v47 }
 0x65b   :  { %v845_v61 = vpop.permute.xlu1 %844 }
 0x65c   :  { %v847_v2 = vmul.f32 %v1243_v20, %v845_v61 }
 0x664   :  { %v1245_v56 = vpop.eup %1244 }
 0x665   :  { %840 = vrot.lane.b32.xlu0 %v1245_v56, %s1352_s8 }
 0x6d7   :  { %v841_v63 = vpop.permute.xlu0 %840 }
 0x6d8   :  { %v843_v3 = vmul.f32 %v841_v63, %v838_v62 }
 0x6da   :  { %v848_v4 = vadd.f32 %v847_v2, %v843_v3 }
 0x6dc   :  { %850 = vrot.lane.b32.xlu1 %v848_v4, %s1352_s8  ;;  %855 = vrot.lane.b32.xlu0 %v848_v4, %s1349_s1 }
 0x74e   :  { %v851_v0 = vpop.permute.xlu1 %850  ;;  %v856_v5 = vpop.permute.xlu0 %855 }
 0x74f   :  { %987 = vst.msk [vmem:[%s1722_s12 + $0x8] sm:$0xff] %vm122_vm1, %v851_v0  ;;  %v858_v1 = vsel %vm463_vm4, %v1619_v54, %v856_v5 }
 0x750   :  { %1135 = vmatmul.mubr.msk.f32.vlgmr.msra.gmra.mrb[4].mxu0 %vm875_vm5, %v858_v1 }
 0x823   :  { %v948_v7 = vpop.f32.mrb[4].mxu0 }
 0x824   :  { %v949_v8 = vadd.f32 %v988_v6, %v948_v7  ;;  %v1136_v9 = vpop.f32.mrb[5].mxu0 }
 0x826   :  { %952 = vst [vmem:[%s1723_s13] sm:$0xff] %v949_v8 }
 0x827   :  { %961 = vsyncpa [#allocation3], 1 }
 0x828   :  { %962 = vsyncpa [#allocation5], 1 }
 0x829   :  { %963 = vsyncpa [#allocation8], 1 }

</bundles_post_ra>
